<compile_context>
chip_gen: v5e
topology: v5e:2x2
jax: 0.10.0
libtpu: 0.0.40
codegen_flags: <defaults>
</compile_context>

<pallas_src>
import functools

import jax
import jax.numpy as jnp
from jax.experimental import pallas as pl
from jax.experimental.pallas import tpu as pltpu


def _round_up(v, m):
    return ((v + m - 1) // m) * m


def _gcn_deconf_kernel(
    adj_ref,    # (TILE_M, N)      stored dtype (int8/bf16/f32) row tile of adjacency
    t_ref,      # (TILE_M, 1)      f32   treatment column for this row tile
    xa_ref,     # (N, nfeat + 2)   bf16  augmented features [x | t | 1] (resident)
    wgc_ref,    # (nfeat, nhid)    f32
    bgc_ref,    # (1, nhid)        f32
    w1_ref,     # (nhid, 2*nhid)   f32   [w00 | w10]
    b1_ref,     # (1, 2*nhid)      f32
    w2a_ref,    # (2*nhid, 3)      f32   cols: [w01 | w11 | 0]
    w2b_ref,    # (nhid, 3)        f32   cols: [0   | 0   | wpp]
    b2_ref,     # (1, 3)           f32
    out_ref,    # (TILE_M, OUT_W)  f32   packed [rep | p1 | y | navg | 0-pad]
    *, nfeat, nhid,
):
    f32 = jnp.float32

    adj = adj_ref[...]
    if adj.dtype != jnp.bfloat16:
        # Widen through f32 (well-supported VPU path) then truncate to bf16 so the
        # dominant matmul runs single-pass on the MXU; the cast hides under the
        # adj DMA of the next tile (workload is HBM-bound).
        adj = adj.astype(f32).astype(jnp.bfloat16)
    xa = xa_ref[...]

    # Single streaming MXU pass over the adjacency tile:
    #   cols 0:nfeat -> adj @ x, col nfeat -> adj @ t, col nfeat+1 -> degree (adj @ 1)
    prod = jnp.dot(adj, xa, preferred_element_type=f32)        # (TILE_M, nfeat+2)
    ax = prod[:, :nfeat]
    at = prod[:, nfeat:nfeat + 1]
    deg = prod[:, nfeat + 1:nfeat + 2]
    # Matches torch.div: zero-degree rows give NaN/inf; rows beyond N (partial last
    # block) are never written back, so garbage there is harmless.
    navg = at / deg

    # GraphConvolution, reordered as (adj @ x) @ W (cheaper since nfeat < nhid), + ReLU.
    rep = jnp.dot(ax, wgc_ref[...], preferred_element_type=f32) + bgc_ref[...]
    rep = jnp.maximum(rep, 0.0)
    # dropout is identity in eval mode

    # Fused outcome heads: one matmul for both hidden heads ...
    h = jnp.dot(rep, w1_ref[...], preferred_element_type=f32) + b1_ref[...]
    h = jnp.maximum(h, 0.0)                                    # [y00 | y10]
    # ... and (y0, y1, logits) from two small dense dots (no concat temporary).
    small = (jnp.dot(h, w2a_ref[...], preferred_element_type=f32)
             + jnp.dot(rep, w2b_ref[...], preferred_element_type=f32)
             + b2_ref[...])
    y0 = small[:, 0:1]
    y1 = small[:, 1:2]
    logits = small[:, 2:3]

    t = t_ref[...]
    y = jnp.where(t > 0, y1, y0)
    p1 = jax.nn.sigmoid(logits)

    pad = out_ref.shape[1] - (nhid + 3)
    out_ref[...] = jnp.concatenate(
        [rep, p1, y, navg, jnp.zeros((rep.shape[0], pad), f32)], axis=1)


def _vmem_params():
    """Generation-aware VMEM budget: (tile budget bytes, vmem_limit_bytes)."""
    try:
        cap = int(getattr(pltpu.get_tpu_info(), "vmem_capacity_bytes", 64 << 20))
    except Exception:
        cap = 64 << 20                              # conservative fallback (v7x per-TC)
    limit = min(int(cap * 0.85), cap - (8 << 20))   # headroom for compiler scratch
    limit = max(limit, 32 << 20)
    budget = int(limit * 0.75)
    return budget, limit


def _pick_tile_m(n_rows, n_cols, adj_itemsize, out_w, nfeat, nhid, vmem_budget):
    """Largest row tile (multiple of 32) whose working set fits the VMEM budget."""
    # Resident blocks (constant block index): xa bf16 + all f32 weights/biases.
    resident = n_rows * (nfeat + 2) * 2
    resident += 4 * (nfeat * nhid + nhid + nhid * 2 * nhid + 2 * nhid
                     + 2 * nhid * 3 + nhid * 3 + 3)
    avail = max(vmem_budget - resident, 2 << 20)
    # Per-row cost of one tile: double-buffered adj/t/out streams, in-kernel cast
    # copies (f32 intermediate + bf16 MXU operand), and f32 temporaries.
    per_row = (2 * n_cols * adj_itemsize            # adj stream (x2 buffers)
               + n_cols * (4 + 2)                   # in-kernel cast copies
               + 2 * 4 + 2 * out_w * 4              # t and packed-output streams
               + (nfeat + 2 + 6 * nhid + out_w + 8) * 4)  # prod/rep/h/small/pack temps
    tile = int(avail // per_row)
    cap = 1024 if vmem_budget >= (64 << 20) else 512
    tile = max(32, min(cap, tile))
    tile = min(tile, _round_up(n_rows, 32))
    # Keep >= 2 row tiles when there is enough work so the "parallel" grid axis has
    # something to shard across v7x's two TensorCores.
    if n_rows >= 64:
        tile = min(tile, _round_up(pl.cdiv(n_rows, 2), 32))
    return max(32, (tile // 32) * 32)


@jax.jit
def gcn_deconf_forward(adj, x, t, params):
    """Returns (p1, -1, y, rep, neighborAverageT) matching the PyTorch forward (eval mode).

    adj is streamed in its stored dtype (int8 recommended for 0/1 adjacency) with no
    wrapper-side cast/pad pre-pass. Zero-degree rows give NaN neighborAverageT,
    matching torch.div semantics.
    """
    N = adj.shape[0]
    nfeat = x.shape[1]
    nhid = params["wgc"].shape[1]
    f32, bf16 = jnp.float32, jnp.bfloat16

    out_w = _round_up(nhid + 3, 128)                 # lane-dense packed output slab
    budget, vmem_limit = _vmem_params()
    tile_m = _pick_tile_m(N, N, jnp.dtype(adj.dtype).itemsize, out_w, nfeat, nhid, budget)
    grid = (pl.cdiv(N, tile_m),)                     # partial last block handled by Pallas

    t_col = t.reshape(N, 1).astype(f32)
    ones = jnp.ones((N, 1), f32)
    # Augmented feature block [x | t | 1]; t/1 are exact in bf16, x picks up ~1e-3
    # relative rounding (accumulation stays f32 on the MXU). O(N*nfeat) — negligible.
    xa = jnp.concatenate([x.astype(f32), t_col, ones], axis=1).astype(bf16)

    wgc = params["wgc"].astype(f32)
    bgc = params["bgc"].astype(f32)
    w1 = jnp.concatenate([params["w00"], params["w10"]], axis=1).astype(f32)
    b1 = jnp.concatenate([params["b00"], params["b10"]], axis=1).astype(f32)
    w2a = jnp.zeros((2 * nhid, 3), f32)
    w2a = w2a.at[0:nhid, 0].set(params["w01"][:, 0].astype(f32))
    w2a = w2a.at[nhid:2 * nhid, 1].set(params["w11"][:, 0].astype(f32))
    w2b = jnp.zeros((nhid, 3), f32).at[:, 2].set(params["wpp"][:, 0].astype(f32))
    b2 = jnp.concatenate([params["b01"], params["b11"], params["bpp"]], axis=1).astype(f32)

    def row_spec(rest):
        return pl.BlockSpec((tile_m,) + tuple(rest),
                            lambda i: (i,) + (0,) * len(rest))

    def const_spec(shape):
        return pl.BlockSpec(tuple(shape), lambda i, _n=len(shape): (0,) * _n)

    kernel = functools.partial(_gcn_deconf_kernel, nfeat=nfeat, nhid=nhid)

    out = pl.pallas_call(
        kernel,
        out_shape=jax.ShapeDtypeStruct((N, out_w), f32),
        grid_spec=pltpu.PrefetchScalarGridSpec(
            num_scalar_prefetch=0,
            grid=grid,
            in_specs=[
                row_spec((N,)),            # adj: streamed row tile, stored dtype
                row_spec((1,)),            # t column
                const_spec(xa.shape),      # resident (constant block index)
                const_spec(wgc.shape),
                const_spec(bgc.shape),
                const_spec(w1.shape),
                const_spec(b1.shape),
                const_spec(w2a.shape),
                const_spec(w2b.shape),
                const_spec(b2.shape),
            ],
            out_specs=row_spec((out_w,)),
        ),
        compiler_params=pltpu.CompilerParams(
            dimension_semantics=("parallel",),       # shard row tiles across v7x's 2 TCs
            vmem_limit_bytes=int(vmem_limit),        # generation-aware (v5e/v6e vs v7x)
        ),
    )(adj, t_col, xa, wgc, bgc, w1, b1, w2a, w2b, b2)

    # TODO(synk): for very large N on v7x (full-width row tile no longer fits 64 MiB
    # VMEM), add a K (adj-column) grid axis marked "arbitrary" with an f32 prod
    # accumulator in scratch and head matmuls/packing under pl.when(k == last).

    rep = out[:, :nhid]
    p1 = out[:, nhid]
    y = out[:, nhid + 1]
    navg = out[:, nhid + 2]
    return p1, -1, y, rep, navg


def init_params(key, nfeat, nhid):
    """Deterministic synthetic parameters. Weights stored as (in, out)."""
    ks = jax.random.split(key, 8)
    u = lambda k, shape, s: jax.random.uniform(k, shape, jnp.float32, -s, s)
    return {
        # GraphConvolution(nfeat, nhid)
        "wgc": u(ks[0], (nfeat, nhid), 1.0 / jnp.sqrt(nfeat)),
        "bgc": u(ks[0], (1, nhid), 1.0 / jnp.sqrt(nfeat)),
        # out_t00[0], out_t10[0]: Linear(nhid, nhid)
        "w00": u(ks[1], (nhid, nhid), 1.0 / jnp.sqrt(nhid)),
        "b00": u(ks[2], (1, nhid), 1.0 / jnp.sqrt(nhid)),
        "w10": u(ks[3], (nhid, nhid), 1.0 / jnp.sqrt(nhid)),
        "b10": u(ks[4], (1, nhid), 1.0 / jnp.sqrt(nhid)),
        # out_t01, out_t11: Linear(nhid, 1)
        "w01": u(ks[5], (nhid, 1), 1.0 / jnp.sqrt(nhid)),
        "b01": u(ks[5], (1, 1), 1.0 / jnp.sqrt(nhid)),
        "w11": u(ks[6], (nhid, 1), 1.0 / jnp.sqrt(nhid)),
        "b11": u(ks[6], (1, 1), 1.0 / jnp.sqrt(nhid)),
        # pp: Linear(nhid, 1)
        "wpp": u(ks[7], (nhid, 1), 1.0 / jnp.sqrt(nhid)),
        "bpp": u(ks[7], (1, 1), 1.0 / jnp.sqrt(nhid)),
    }


def _reference_forward(adj, x, t, p):
    """Pure-JAX f32 reference (mirrors the PyTorch code) for a correctness check."""
    neighbors = jnp.sum(adj, axis=1)
    navg = (adj @ t) / neighbors
    rep = jax.nn.relu(adj @ (x @ p["wgc"]) + p["bgc"][0])
    y00 = jax.nn.relu(rep @ p["w00"] + p["b00"][0])
    y10 = jax.nn.relu(rep @ p["w10"] + p["b10"][0])
    y0 = (y00 @ p["w01"] + p["b01"][0]).reshape(-1)
    y1 = (y10 @ p["w11"] + p["b11"][0]).reshape(-1)
    y = jnp.where(t > 0, y1, y0)
    p1 = jax.nn.sigmoid(rep @ p["wpp"] + p["bpp"][0]).reshape(-1)
    return p1, -1, y, rep, navg


if __name__ == "__main__":
    N, NFEAT, NHID = 128, 16, 32

    key = jax.random.PRNGKey(0)
    k_adj, k_x, k_t, k_param = jax.random.split(key, 4)

    # symmetric dense 0/1 adjacency with self loops (avoids zero-degree rows),
    # stored as int8: streamed as-is by the kernel (no wrapper-side cast/pad).
    a = jax.random.uniform(k_adj, (N, N)) < 0.1
    adj_bool = a | a.T | jnp.eye(N, dtype=bool)
    adj = adj_bool.astype(jnp.int8)
    x = jax.random.normal(k_x, (N, NFEAT), dtype=jnp.float32)
    t = (jax.random.uniform(k_t, (N,)) < 0.5).astype(jnp.float32)

    params = init_params(k_param, NFEAT, NHID)

    p1, neg1, y, rep, navg = gcn_deconf_forward(adj, x, t, params)
    jax.block_until_ready((p1, y, rep, navg))

    # sanity check against plain-JAX f32 reference (kernel uses bf16 for the adj/x
    # matmul with f32 accumulation -> exact for navg, ~1e-3 relative for rep/y/p1)
    adj_f32 = adj.astype(jnp.float32)
    rp1, _, ry, rrep, rnavg = _reference_forward(adj_f32, x, t, params)
    assert neg1 == -1
    assert jnp.allclose(navg, rnavg, atol=1e-5), "neighborAverageT mismatch"
    assert jnp.allclose(rep, rrep, atol=5e-2, rtol=1e-2), "rep mismatch"
    assert jnp.allclose(y, ry, atol=5e-2, rtol=1e-2), "y mismatch"
    assert jnp.allclose(p1, rp1, atol=2e-2), "p1 mismatch"

    print("KERNEL_OK")
</pallas_src>

<mosaic_0001>
module attributes {stable_mosaic.version = 11 : i64} {
  func.func @_gcn_deconf_kernel(%arg0: i32, %arg1: memref<64x128xi8, #tpu.memory_space<vmem>>, %arg2: memref<64x1xf32, #tpu.memory_space<vmem>>, %arg3: memref<128x18xbf16, #tpu.memory_space<vmem>>, %arg4: memref<16x32xf32, #tpu.memory_space<vmem>>, %arg5: memref<1x32xf32, #tpu.memory_space<vmem>>, %arg6: memref<32x64xf32, #tpu.memory_space<vmem>>, %arg7: memref<1x64xf32, #tpu.memory_space<vmem>>, %arg8: memref<64x3xf32, #tpu.memory_space<vmem>>, %arg9: memref<32x3xf32, #tpu.memory_space<vmem>>, %arg10: memref<1x3xf32, #tpu.memory_space<vmem>>, %arg11: memref<64x128xf32, #tpu.memory_space<vmem>>) attributes {dimension_semantics = [#tpu.dimension_semantics<parallel>], iteration_bounds = array<i64: 2>, scalar_prefetch = 0 : i64, scratch_operands = 0 : i64, tpu.core_type = #tpu.core_type<tc>, window_params = [{transform_indices = @transform_0, window_bounds = array<i64: 64, 128>}, {transform_indices = @transform_1, window_bounds = array<i64: 64, 1>}, {pipeline_mode = #tpu.pipeline_mode<synchronous>, transform_indices = @transform_2, window_bounds = array<i64: 128, 18>}, {pipeline_mode = #tpu.pipeline_mode<synchronous>, transform_indices = @transform_3, window_bounds = array<i64: 16, 32>}, {pipeline_mode = #tpu.pipeline_mode<synchronous>, transform_indices = @transform_4, window_bounds = array<i64: 1, 32>}, {pipeline_mode = #tpu.pipeline_mode<synchronous>, transform_indices = @transform_5, window_bounds = array<i64: 32, 64>}, {pipeline_mode = #tpu.pipeline_mode<synchronous>, transform_indices = @transform_6, window_bounds = array<i64: 1, 64>}, {pipeline_mode = #tpu.pipeline_mode<synchronous>, transform_indices = @transform_7, window_bounds = array<i64: 64, 3>}, {pipeline_mode = #tpu.pipeline_mode<synchronous>, transform_indices = @transform_8, window_bounds = array<i64: 32, 3>}, {pipeline_mode = #tpu.pipeline_mode<synchronous>, transform_indices = @transform_9, window_bounds = array<i64: 1, 3>}, {transform_indices = @transform_10, window_bounds = array<i64: 64, 128>}]} {
    %c0 = arith.constant 0 : index
    %c0_0 = arith.constant 0 : index
    %0 = vector.load %arg1[%c0, %c0_0] : memref<64x128xi8, #tpu.memory_space<vmem>>, vector<64x128xi8>
    %1 = arith.sitofp %0 : vector<64x128xi8> to vector<64x128xf32>
    %2 = arith.truncf %1 : vector<64x128xf32> to vector<64x128xbf16>
    %c0_1 = arith.constant 0 : index
    %c0_2 = arith.constant 0 : index
    %3 = vector.load %arg3[%c0_1, %c0_2] : memref<128x18xbf16, #tpu.memory_space<vmem>>, vector<128x18xbf16>
    %cst = arith.constant dense<0.000000e+00> : vector<64x18xf32>
    %4 = tpu.matmul %2, %3, %cst {dimension_numbers = #tpu.dot_dimension_numbers<[1], [0], [0], [1], [0, 0, 1, 1], [], []>} : vector<64x128xbf16>, vector<128x18xbf16>, vector<64x18xf32> -> vector<64x18xf32>
    %5 = vector.extract_strided_slice %4 {offsets = [0, 0], sizes = [64, 16], strides = [1, 1]} : vector<64x18xf32> to vector<64x16xf32>
    %6 = vector.extract_strided_slice %4 {offsets = [0, 16], sizes = [64, 1], strides = [1, 1]} : vector<64x18xf32> to vector<64x1xf32>
    %7 = vector.extract_strided_slice %4 {offsets = [0, 17], sizes = [64, 1], strides = [1, 1]} : vector<64x18xf32> to vector<64x1xf32>
    %8 = arith.divf %6, %7 : vector<64x1xf32>
    %c0_3 = arith.constant 0 : index
    %c0_4 = arith.constant 0 : index
    %9 = vector.load %arg4[%c0_3, %c0_4] : memref<16x32xf32, #tpu.memory_space<vmem>>, vector<16x32xf32>
    %cst_5 = arith.constant dense<0.000000e+00> : vector<64x32xf32>
    %10 = tpu.matmul %5, %9, %cst_5 {dimension_numbers = #tpu.dot_dimension_numbers<[1], [0], [0], [1], [0, 0, 1, 1], [], []>} : vector<64x16xf32>, vector<16x32xf32>, vector<64x32xf32> -> vector<64x32xf32>
    %c0_6 = arith.constant 0 : index
    %c0_7 = arith.constant 0 : index
    %11 = vector.load %arg5[%c0_6, %c0_7] : memref<1x32xf32, #tpu.memory_space<vmem>>, vector<1x32xf32>
    %12 = vector.broadcast %11 : vector<1x32xf32> to vector<64x32xf32>
    %13 = arith.addf %10, %12 : vector<64x32xf32>
    %cst_8 = arith.constant 0.000000e+00 : f32
    %14 = vector.broadcast %cst_8 : f32 to vector<64x32xf32>
    %15 = arith.maximumf %13, %14 : vector<64x32xf32>
    %c0_9 = arith.constant 0 : index
    %c0_10 = arith.constant 0 : index
    %16 = vector.load %arg6[%c0_9, %c0_10] : memref<32x64xf32, #tpu.memory_space<vmem>>, vector<32x64xf32>
    %cst_11 = arith.constant dense<0.000000e+00> : vector<64x64xf32>
    %17 = tpu.matmul %15, %16, %cst_11 {dimension_numbers = #tpu.dot_dimension_numbers<[1], [0], [0], [1], [0, 0, 1, 1], [], []>} : vector<64x32xf32>, vector<32x64xf32>, vector<64x64xf32> -> vector<64x64xf32>
    %c0_12 = arith.constant 0 : index
    %c0_13 = arith.constant 0 : index
    %18 = vector.load %arg7[%c0_12, %c0_13] : memref<1x64xf32, #tpu.memory_space<vmem>>, vector<1x64xf32>
    %19 = vector.broadcast %18 : vector<1x64xf32> to vector<64x64xf32>
    %20 = arith.addf %17, %19 : vector<64x64xf32>
    %cst_14 = arith.constant 0.000000e+00 : f32
    %21 = vector.broadcast %cst_14 : f32 to vector<64x64xf32>
    %22 = arith.maximumf %20, %21 : vector<64x64xf32>
    %c0_15 = arith.constant 0 : index
    %c0_16 = arith.constant 0 : index
    %23 = vector.load %arg8[%c0_15, %c0_16] : memref<64x3xf32, #tpu.memory_space<vmem>>, vector<64x3xf32>
    %cst_17 = arith.constant dense<0.000000e+00> : vector<64x3xf32>
    %24 = tpu.matmul %22, %23, %cst_17 {dimension_numbers = #tpu.dot_dimension_numbers<[1], [0], [0], [1], [0, 0, 1, 1], [], []>} : vector<64x64xf32>, vector<64x3xf32>, vector<64x3xf32> -> vector<64x3xf32>
    %c0_18 = arith.constant 0 : index
    %c0_19 = arith.constant 0 : index
    %25 = vector.load %arg9[%c0_18, %c0_19] : memref<32x3xf32, #tpu.memory_space<vmem>>, vector<32x3xf32>
    %cst_20 = arith.constant dense<0.000000e+00> : vector<64x3xf32>
    %26 = tpu.matmul %15, %25, %cst_20 {dimension_numbers = #tpu.dot_dimension_numbers<[1], [0], [0], [1], [0, 0, 1, 1], [], []>} : vector<64x32xf32>, vector<32x3xf32>, vector<64x3xf32> -> vector<64x3xf32>
    %27 = arith.addf %24, %26 : vector<64x3xf32>
    %c0_21 = arith.constant 0 : index
    %c0_22 = arith.constant 0 : index
    %28 = vector.load %arg10[%c0_21, %c0_22] : memref<1x3xf32, #tpu.memory_space<vmem>>, vector<1x3xf32>
    %29 = vector.broadcast %28 : vector<1x3xf32> to vector<64x3xf32>
    %30 = arith.addf %27, %29 : vector<64x3xf32>
    %31 = vector.extract_strided_slice %30 {offsets = [0, 0], sizes = [64, 1], strides = [1, 1]} : vector<64x3xf32> to vector<64x1xf32>
    %32 = vector.extract_strided_slice %30 {offsets = [0, 1], sizes = [64, 1], strides = [1, 1]} : vector<64x3xf32> to vector<64x1xf32>
    %33 = vector.extract_strided_slice %30 {offsets = [0, 2], sizes = [64, 1], strides = [1, 1]} : vector<64x3xf32> to vector<64x1xf32>
    %c0_23 = arith.constant 0 : index
    %c0_24 = arith.constant 0 : index
    %34 = vector.load %arg2[%c0_23, %c0_24] : memref<64x1xf32, #tpu.memory_space<vmem>>, vector<64x1xf32>
    %cst_25 = arith.constant 0.000000e+00 : f32
    %35 = vector.broadcast %cst_25 : f32 to vector<64x1xf32>
    %36 = arith.cmpf ogt, %34, %35 : vector<64x1xf32>
    %37 = arith.select %36, %32, %31 : vector<64x1xi1>, vector<64x1xf32>
    %38 = arith.negf %33 : vector<64x1xf32>
    %39 = math.exp %38 : vector<64x1xf32>
    %cst_26 = arith.constant 1.000000e+00 : f32
    %40 = vector.broadcast %cst_26 : f32 to vector<64x1xf32>
    %41 = arith.addf %40, %39 : vector<64x1xf32>
    %42 = arith.divf %40, %41 : vector<64x1xf32>
    %cst_27 = arith.constant 0.000000e+00 : f32
    %43 = vector.broadcast %cst_27 : f32 to vector<64x93xf32>
    %44 = tpu.concatenate %15, %42, %37, %8, %43 in 1 : vector<64x32xf32>, vector<64x1xf32>, vector<64x1xf32>, vector<64x1xf32>, vector<64x93xf32> -> vector<64x128xf32>
    %c0_28 = arith.constant 0 : index
    %c0_29 = arith.constant 0 : index
    %45 = vector.load %arg11[%c0_28, %c0_29] : memref<64x128xf32, #tpu.memory_space<vmem>>, vector<64x128xf32>
    tpu.vector_store %arg11[%c0_28, %c0_29], %44 {strides = array<i32>} : memref<64x128xf32, #tpu.memory_space<vmem>>, vector<64x128xf32>,
    return
  }
  func.func @transform_0(%arg0: i32) -> (i32, i32) {
    %c0_i32 = arith.constant 0 : i32
    %c0_i32_0 = arith.constant 0 : i32
    return %arg0, %c0_i32 : i32, i32
  }
  func.func @transform_1(%arg0: i32) -> (i32, i32) {
    %c0_i32 = arith.constant 0 : i32
    %c0_i32_0 = arith.constant 0 : i32
    return %arg0, %c0_i32 : i32, i32
  }
  func.func @transform_2(%arg0: i32) -> (i32, i32) {
    %c0_i32 = arith.constant 0 : i32
    %c0_i32_0 = arith.constant 0 : i32
    %c0_i32_1 = arith.constant 0 : i32
    return %c0_i32, %c0_i32_0 : i32, i32
  }
  func.func @transform_3(%arg0: i32) -> (i32, i32) {
    %c0_i32 = arith.constant 0 : i32
    %c0_i32_0 = arith.constant 0 : i32
    %c0_i32_1 = arith.constant 0 : i32
    return %c0_i32, %c0_i32_0 : i32, i32
  }
  func.func @transform_4(%arg0: i32) -> (i32, i32) {
    %c0_i32 = arith.constant 0 : i32
    %c0_i32_0 = arith.constant 0 : i32
    %c0_i32_1 = arith.constant 0 : i32
    return %c0_i32, %c0_i32_0 : i32, i32
  }
  func.func @transform_5(%arg0: i32) -> (i32, i32) {
    %c0_i32 = arith.constant 0 : i32
    %c0_i32_0 = arith.constant 0 : i32
    %c0_i32_1 = arith.constant 0 : i32
    return %c0_i32, %c0_i32_0 : i32, i32
  }
  func.func @transform_6(%arg0: i32) -> (i32, i32) {
    %c0_i32 = arith.constant 0 : i32
    %c0_i32_0 = arith.constant 0 : i32
    %c0_i32_1 = arith.constant 0 : i32
    return %c0_i32, %c0_i32_0 : i32, i32
  }
  func.func @transform_7(%arg0: i32) -> (i32, i32) {
    %c0_i32 = arith.constant 0 : i32
    %c0_i32_0 = arith.constant 0 : i32
    %c0_i32_1 = arith.constant 0 : i32
    return %c0_i32, %c0_i32_0 : i32, i32
  }
  func.func @transform_8(%arg0: i32) -> (i32, i32) {
    %c0_i32 = arith.constant 0 : i32
    %c0_i32_0 = arith.constant 0 : i32
    %c0_i32_1 = arith.constant 0 : i32
    return %c0_i32, %c0_i32_0 : i32, i32
  }
  func.func @transform_9(%arg0: i32) -> (i32, i32) {
    %c0_i32 = arith.constant 0 : i32
    %c0_i32_0 = arith.constant 0 : i32
    %c0_i32_1 = arith.constant 0 : i32
    return %c0_i32, %c0_i32_0 : i32, i32
  }
  func.func @transform_10(%arg0: i32) -> (i32, i32) {
    %c0_i32 = arith.constant 0 : i32
    %c0_i32_0 = arith.constant 0 : i32
    return %arg0, %c0_i32 : i32, i32
  }
}

</mosaic_0001>

<bundles_post_ra>
// kernel: gcn_deconf_forward.1
= control target key start
LH: loop header
LB: loop body
LE: loop exit
PB: predicated region body
PF: predicated region fallthrough
CT: control target
= control target key end

     0   :  { %s1589_s13 = smov 0   ;;  %s2059_s0 = inlined_call_operand.vmem [shape: s8[128,128], index: 0, kind: input, shape index: {}]   ;;  %s2060_s1 = inlined_call_operand.vmem [shape: f32[128,1], index: 1, kind: input, shape index: {}]   ;;  %s2061_s2 = inlined_call_operand.vmem [shape: bf16[128,18], index: 2, kind: input, shape index: {}]   ;;  %s2062_s3 = inlined_call_operand.vmem [shape: f32[16,32], index: 3, kind: input, shape index: {}]   ;;  %s2063_s4 = inlined_call_operand.vmem [shape: f32[1,32], index: 4, kind: input, shape index: {}]   ;;  %s2064_s5 = inlined_call_operand.vmem [shape: f32[32,64], index: 5, kind: input, shape index: {}]   ;;  %s2065_s6 = inlined_call_operand.vmem [shape: f32[1,64], index: 6, kind: input, shape index: {}]   ;;  %s2066_s7 = inlined_call_operand.vmem [shape: f32[64,3], index: 7, kind: input, shape index: {}]   ;;  %s2067_s8 = inlined_call_operand.vmem [shape: f32[32,3], index: 8, kind: input, shape index: {}]   ;;  %s2068_s9 = inlined_call_operand.vmem [shape: f32[1,3], index: 9, kind: input, shape index: {}]   ;;  %s2069_s10 = inlined_call_operand.vmem [shape: f32[128,128], index: 10, kind: output, shape index: {}]  }
   0x1 LB: > { %s1352_s14 = sadd.s32 4294967295, %s1528_s13   ;;  %p1356_p0 = scmp.ge.s32.totalorder %s1528_s13, 1  ;;  %s1528_s13 = sphi %s1589_s13, %s20_s13  }
   0x2   : > { %p324_p1 = scmp.lt.s32.totalorder %s1528_s13, 3 }
   0x4   : > { %p325_p2 = pnand %p1356_p0, %p324_p1 }
   0x5   : > { %s1357_s17 = sshll.u32 (!%p325_p2), %s1352_s14, 1  ;;  %s1530_s22 = smov (!%p325_p2), 127  }
   0x6   : > { %328 = sbr.rel (%p325_p2) target bundleno = 875 (0x36b), region = 60  ;;  %p368_p3 = scmp.lt.s32.totalorder (!%p325_p2), %s1357_s17, 3 }
   0x7   : > { %s1531_s15 = smov (!%p325_p2), 18   ;;  %s1359_s30 = sshll.u32 (!%p325_p2), %s1352_s14, 3 }
   0x8   : > { %p374_p4 = scmp.lt.s32.totalorder (!%p325_p2), %s1359_s30, 15  ;;  %s1533_s16 = smov (!%p325_p2), 33  }
   0xb   : > { %v1444_v0 = vld [vmem:[%s2061_s2 + $0x38] sm:$0xff]  ;;  %v1443_v1 = vld [vmem:[%s2061_s2 + $0x30] sm:$0xff]  ;;  %v1442_v2 = vld [vmem:[%s2061_s2 + $0x28] sm:$0xff]  ;;  %s2073_s17 = smov (!%p368_p3, %s1357_s17), 3  ;;  %vm658_vm0 = vcmask 130048   ;;  %vm732_vm2 = vcmask 261120  }
   0xc   : > { %471 = vmatpush.bf16.msra.mxu0 %v1444_v0  ;;  %v1441_v3 = vld [vmem:[%s2061_s2 + $0x20] sm:$0xff]  ;;  %s1358_s24 = sshll.u32 %s2073_s17, 3  ;;  %v1440_v4 = vld [vmem:[%s2061_s2 + $0x18] sm:$0xff]  ;;  %v1439_v5 = vld [vmem:[%s2061_s2 + $0x10] sm:$0xff]  ;;  %vm859_vm14 = vcmask 523264   ;;  %s2075_s30 = smov (!%p374_p4, %s1359_s30), 15 }
   0xd   : > { %s371_s29 = scalar_lea.vmem %s2059_s0, %s1358_s24  ;;  %v1438_v9 = vld [vmem:[%s2061_s2 + $0x8] sm:$0xff]  ;;  %v1437_v12 = vld [vmem:[%s2061_s2] sm:$0xff]  ;;  %v727_v40 = vld [vmem:[%s2064_s5 + $0x18] sm:$0xff]  ;;  %s1360_s14 = sshll.u32 %s2075_s30, 3 }
   0xe   : > { %v385_v6 = vld [vmem:[%s371_s29] sm:$0xff]  ;;  %v653_v19 = vld [vmem:[%s2062_s3 + $0x8] sm:$0xff]  ;;  %769 = vmatpush.msra.mxu2 %v727_v40  ;;  %v726_v41 = vld [vmem:[%s2064_s5 + $0x10] sm:$0xff]  ;;  %s1945_s12 = scalar_lea.vmem %s2060_s1, %s1360_s14  ;;  %s2004_s19 = scalar_lea.vmem %s2069_s10, %s1360_s14 }
   0xf   : > { %v387_v7 = vunpack.c.0.s8 %v385_v6  ;;  %v388_v8 = vunpack.c.1.s8 %v385_v6  ;;  %v389_v14 = vunpack.c.2.s8 %v385_v6  ;;  %v390_v15 = vunpack.c.3.s8 %v385_v6  ;;  %v386_v20 = vld [vmem:[%s371_s29 + $0x8] sm:$0xff]  ;;  %689 = vmatpush.msra.mxu1 %v653_v19  ;;  %1445 = vmatpush.msra.mxu3 %v653_v19  ;;  %v652_v31 = vld [vmem:[%s2062_s3] sm:$0xff]  ;;  %s1532_s29 = smov 30  }
  0x10   : > { %472 = vmatpush.bf16.msra.mxu0 %v1443_v1  ;;  %v391_v21 = vunpack.c.0.s8 %v386_v20  ;;  %v392_v22 = vunpack.c.1.s8 %v386_v20  ;;  %v393_v26 = vunpack.c.2.s8 %v386_v20  ;;  %v394_v27 = vunpack.c.3.s8 %v386_v20  ;;  %770 = vmatpush.msra.mxu2 %v726_v41  ;;  %v725_v42 = vld [vmem:[%s2064_s5 + $0x8] sm:$0xff]  ;;  %v724_v43 = vld [vmem:[%s2064_s5] sm:$0xff] }
  0x11   : > { %v395_v10 = vcvt.s32.f32 %v387_v7  ;;  %v396_v11 = vcvt.s32.f32 %v388_v8  ;;  %v397_v16 = vcvt.s32.f32 %v389_v14  ;;  %v398_v17 = vcvt.s32.f32 %v390_v15  ;;  %690 = vmatpush.msra.mxu1 %v652_v31  ;;  %1446 = vmatpush.msra.mxu3 %v652_v31  ;;  %v1695_v48 = vld [vmem:[%s2063_s4] ss:$0 sm:$0xff] }
  0x12   : > { %v399_v23 = vcvt.s32.f32 %v391_v21  ;;  %v400_v24 = vcvt.s32.f32 %v392_v22  ;;  %v401_v28 = vcvt.s32.f32 %v393_v26  ;;  %v402_v29 = vcvt.s32.f32 %v394_v27  ;;  %771 = vmatpush.msra.mxu2 %v725_v42 }
  0x13   : > { %v403_v13 = vpack.c.bf16 %v396_v11, %v395_v10  ;;  %v404_v18 = vpack.c.bf16 %v398_v17, %v397_v16  ;;  %1447 = vmatpush.msrb.mxu3 %v727_v40  ;;  %v814_v40 = vld [vmem:[%s2067_s8] sm:$0xff] }
  0x14   : > { %473 = vmatpush.bf16.msra.mxu0 %v1442_v2  ;;  %v405_v25 = vpack.c.bf16 %v400_v24, %v399_v23  ;;  %v406_v30 = vpack.c.bf16 %v402_v29, %v401_v28  ;;  %772 = vmatpush.msra.mxu2 %v724_v43 }
  0x15   : > { %1448 = vmatpush.msrb.mxu3 %v726_v41 }
  0x17   : > { %1449 = vmatpush.msrb.mxu3 %v725_v42 }
  0x18   : > { %474 = vmatpush.bf16.msra.mxu0 %v1441_v3 }
  0x19   : > { %1450 = vmatpush.msrb.mxu3 %v724_v43 }
  0x1c   : > { %475 = vmatpush.bf16.msra.mxu0 %v1440_v4 }
  0x20   : > { %476 = vmatpush.bf16.msra.mxu0 %v1439_v5 }
  0x24   : > { %477 = vmatpush.bf16.msra.mxu0 %v1438_v9 }
  0x28   : > { %478 = vmatpush.bf16.msra.mxu0 %v1437_v12 }
  0x2b   : > { %479 = vmatmul.bf16.vlgmr.msra.gmra.mxu0 %v403_v13 }
  0x3b   : > { %484 = vmatmul.bf16.gmra.mxu0 %v404_v18 }
  0x4b   : > { %489 = vmatmul.bf16.gmra.mxu0 %v405_v25 }
  0x5b   : > { %494 = vmatmul.bf16.gmra.mxu0 %v406_v30 }
  0xa8   : > { %v1632_v32 = vpop.f32.mrf.mxu0 }
  0xa9   : > { %508 = vrot.lane.b32.xlu0 %v1632_v32, %s1530_s22  ;;  %1395 = vmatmul.msk.f32.vlgmr.msra.gmra.mxu1 %vm658_vm0, %v1632_v32 }
  0xb0   : > { %v1638_v33 = vpop.f32.mrf.mxu0 }
  0xb1   : > { %510 = vrot.lane.b32.xlu0 %v1638_v33, %s1530_s22  ;;  %1396 = vmatmul.msk.f32.gmra.mxu1 %vm658_vm0, %v1638_v33 }
  0xb8   : > { %v1644_v34 = vpop.f32.mrf.mxu0 }
  0xb9   : > { %512 = vrot.lane.b32.xlu1 %v1644_v34, %s1530_s22  ;;  %1397 = vmatmul.msk.f32.gmra.mxu1 %vm658_vm0, %v1644_v34 }
  0xc0   : > { %v1650_v35 = vpop.f32.mrf.mxu0 }
  0xc1   : > { %514 = vrot.lane.b32.xlu1 %v1650_v35, %s1530_s22  ;;  %1398 = vmatmul.msk.f32.gmra.mxu1 %vm658_vm0, %v1650_v35 }
  0xc8   : > { %v1656_v36 = vpop.f32.mrf.mxu0 }
  0xc9   : > { %516 = vrot.lane.b32.xlu2 %v1656_v36, %s1530_s22  ;;  %1399 = vmatmul.msk.f32.gmra.mxu1 %vm658_vm0, %v1656_v36 }
  0xd0   : > { %v1662_v37 = vpop.f32.mrf.mxu0 }
  0xd1   : > { %518 = vrot.lane.b32.xlu2 %v1662_v37, %s1530_s22  ;;  %1400 = vmatmul.msk.f32.gmra.mxu1 %vm658_vm0, %v1662_v37 }
  0xd8   : > { %v1668_v38 = vpop.f32.mrf.mxu0 }
  0xd9   : > { %520 = vrot.lane.b32.xlu0 %v1668_v38, %s1530_s22  ;;  %1401 = vmatmul.msk.f32.gmra.mxu1 %vm658_vm0, %v1668_v38 }
  0xe0   : > { %v1674_v39 = vpop.f32.mrf.mxu0 }
  0xe1   : > { %522 = vrot.lane.b32.xlu1 %v1674_v39, %s1530_s22  ;;  %1402 = vmatmul.msk.f32.vlgmr.msra.gmra.mxu3 %vm658_vm0, %v1674_v39 }
 0x11b   : > { %v509_v44 = vpop.permute.xlu0 %508 }
 0x11c   : > { %1474 = vrcp.f32 %v509_v44  ;;  %v543_v53 = vand.u32 2147483648, %v509_v44  ;;  %vm537_vm3 = vweird.f32 %v509_v44  ;;  %v541_v56 = vand.u32 2147483647, %v509_v44 }
 0x11e   : > { %v544_v61 = vor.u32 1.1754944e-38, %v543_v53  ;;  %vm542_vm5 = vcmp.eq.f32.partialorder %v541_v56, 8.507059e+37  ;;  %v810_v53 = vld [vmem:[%s2066_s7 + $0x20] sm:$0xff]  ;;  %v808_v56 = vld [vmem:[%s2066_s7 + $0x10] sm:$0xff] }
 0x122   : > { %v1475_v45 = vpop.eup %1474 }
 0x123   : > { %v533_v46 = vmul.f32 %v1475_v45, %v509_v44  ;;  %v511_v47 = vpop.permute.xlu0 %510  ;;  %vm538_vm1 = vweird.f32 %v1475_v45 }
 0x124   : > { %1476 = vrcp.f32 %v511_v47  ;;  %vm539_vm4 = vmor %vm537_vm3, %vm538_vm1  ;;  %v558_v63 = vand.u32 2147483648, %v511_v47  ;;  %v556_v5 = vand.u32 2147483647, %v511_v47  ;;  %vm552_vm7 = vweird.f32 %v511_v47 }
 0x125   : > { %v534_v49 = vsub.f32 1.0, %v533_v46 }
 0x126   : > { %v692_v50 = vpop.f32.mrf.mxu1  ;;  %v559_v9 = vor.u32 1.1754944e-38, %v558_v63  ;;  %vm557_vm9 = vcmp.eq.f32.partialorder %v556_v5, 8.507059e+37 }
 0x127   : > { %v535_v51 = vmul.f32 %v1475_v45, %v534_v49  ;;  %v693_v52 = vadd.f32 %v1695_v48, %v692_v50 }
 0x129   : > { %v1698_v54 = vmax.f32 %v693_v52, 0.0  ;;  %v536_v55 = vadd.f32 %v1475_v45, %v535_v51  ;;  %v813_v51 = vld [vmem:[%s2066_s7 + $0x38] sm:$0xff]  ;;  %v812_v52 = vld [vmem:[%s2066_s7 + $0x30] sm:$0xff] }
 0x12a   : > { %v1477_v57 = vpop.eup %1476  ;;  %892 = vmatpush.msrb.mxu1 %v813_v51  ;;  %1451 = vmatpush.msrb.mxu2 %v813_v51 }
 0x12b   : > { %v548_v58 = vmul.f32 %v1477_v57, %v511_v47  ;;  %1403 = vmatmul.msk.f32.vlgmr.msra.gmra.mxu2 %vm732_vm2, %v1698_v54  ;;  %v513_v59 = vpop.permute.xlu1 %512  ;;  %v540_v60 = vsel %vm539_vm4, %v1475_v45, %v536_v55  ;;  %vm553_vm6 = vweird.f32 %v1477_v57  ;;  %v809_v55 = vld [vmem:[%s2066_s7 + $0x18] sm:$0xff] }
 0x12c   : > { %1478 = vrcp.f32 %v513_v59  ;;  %v545_v1 = vsel %vm542_vm5, %v544_v61, %v540_v60  ;;  %vm554_vm8 = vmor %vm552_vm7, %vm553_vm6  ;;  %v573_v14 = vand.u32 2147483648, %v513_v59  ;;  %v571_v19 = vand.u32 2147483647, %v513_v59  ;;  %893 = vmatpush.msrb.mxu1 %v812_v52  ;;  %1452 = vmatpush.msrb.mxu2 %v812_v52 }
 0x12d   : > { %v549_v62 = vsub.f32 1.0, %v548_v58  ;;  %v546_v4 = vmul.f32 %v545_v1, %v1632_v32  ;;  %vm567_vm11 = vweird.f32 %v513_v59  ;;  %v817_v32 = vld [vmem:[%s2067_s8 + $0x18] sm:$0xff]  ;;  %v806_v58 = vld [vmem:[%s2066_s7] sm:$0xff] }
 0x12e   : > { %v695_v0 = vpop.f32.mrf.mxu1  ;;  %v574_v22 = vor.u32 1.1754944e-38, %v573_v14  ;;  %vm572_vm13 = vcmp.eq.f32.partialorder %v571_v19, 8.507059e+37  ;;  %830 = vmatpush.msra.mxu3 %v817_v32 }
 0x12f   : > { %v550_v2 = vmul.f32 %v1477_v57, %v549_v62  ;;  %v696_v3 = vadd.f32 %v1695_v48, %v695_v0  ;;  %1217 = vrot.lane.b32.xlu2 %v546_v4, %s1531_s15 }
 0x131   : > { %v1704_v6 = vmax.f32 %v696_v3, 0.0  ;;  %v551_v7 = vadd.f32 %v1477_v57, %v550_v2 }
 0x132   : > { %v1479_v8 = vpop.eup %1478 }
 0x133   : > { %v563_v10 = vmul.f32 %v1479_v8, %v513_v59  ;;  %1404 = vmatmul.msk.f32.gmra.mxu2 %vm732_vm2, %v1704_v6  ;;  %v555_v11 = vsel %vm554_vm8, %v1477_v57, %v551_v7  ;;  %vm568_vm10 = vweird.f32 %v1479_v8  ;;  %v807_v57 = vld [vmem:[%s2066_s7 + $0x8] sm:$0xff]  ;;  %v1472_v59 = vld [vmem:[%s2065_s6] ss:$0 sm:$0xff] }
 0x134   : > { %v560_v13 = vsel %vm557_vm9, %v559_v9, %v555_v11  ;;  %vm569_vm12 = vmor %vm567_vm11, %vm568_vm10 }
 0x135   : > { %v564_v12 = vsub.f32 1.0, %v563_v10  ;;  %v561_v16 = vmul.f32 %v560_v13, %v1638_v33  ;;  %v816_v33 = vld [vmem:[%s2067_s8 + $0x10] sm:$0xff] }
 0x136   : > { %v698_v15 = vpop.f32.mrf.mxu1  ;;  %831 = vmatpush.msra.mxu3 %v816_v33 }
 0x137   : > { %v565_v17 = vmul.f32 %v1479_v8, %v564_v12  ;;  %v699_v18 = vadd.f32 %v1695_v48, %v698_v15  ;;  %1219 = vrot.lane.b32.xlu0 %v561_v16, %s1531_s15 }
 0x139   : > { %v1712_v20 = vmax.f32 %v699_v18, 0.0  ;;  %v566_v21 = vadd.f32 %v1479_v8, %v565_v17 }
 0x13b   : > { %1405 = vmatmul.msk.f32.gmra.mxu2 %vm732_vm2, %v1712_v20  ;;  %v570_v23 = vsel %vm569_vm12, %v1479_v8, %v566_v21 }
 0x13c   : > { %v575_v24 = vsel %vm572_vm13, %v574_v22, %v570_v23  ;;  %v1809_v23 = vld [vmem:[%s2068_s9] ss:$0 sm:$0xff] }
 0x13d   : > { %v576_v25 = vmul.f32 %v575_v24, %v1644_v34  ;;  %v815_v34 = vld [vmem:[%s2067_s8 + $0x8] sm:$0xff] }
 0x13e   : > { %v701_v26 = vpop.f32.mrf.mxu1  ;;  %832 = vmatpush.msra.mxu3 %v815_v34 }
 0x13f   : > { %v702_v27 = vadd.f32 %v1695_v48, %v701_v26  ;;  %1221 = vrot.lane.b32.xlu1 %v576_v25, %s1531_s15 }
 0x140   : > { %833 = vmatpush.msra.mxu3 %v814_v40 }
 0x141   : > { %v1719_v28 = vmax.f32 %v702_v27, 0.0 }
 0x143   : > { %1406 = vmatmul.msk.f32.gmra.mxu2 %vm732_vm2, %v1719_v28 }
 0x146   : > { %v704_v29 = vpop.f32.mrf.mxu1 }
 0x147   : > { %v705_v30 = vadd.f32 %v1695_v48, %v704_v29 }
 0x149   : > { %v1724_v31 = vmax.f32 %v705_v30, 0.0 }
 0x14b   : > { %1407 = vmatmul.msk.f32.gmra.mxu2 %vm732_vm2, %v1724_v31 }
 0x14e   : > { %v707_v41 = vpop.f32.mrf.mxu1 }
 0x14f   : > { %v708_v42 = vadd.f32 %v1695_v48, %v707_v41 }
 0x151   : > { %v1741_v43 = vmax.f32 %v708_v42, 0.0 }
 0x153   : > { %1408 = vmatmul.msk.f32.gmra.mxu2 %vm732_vm2, %v1741_v43 }
 0x156   : > { %v710_v44 = vpop.f32.mrf.mxu1 }
 0x157   : > { %v711_v45 = vadd.f32 %v1695_v48, %v710_v44 }
 0x159   : > { %v1746_v46 = vmax.f32 %v711_v45, 0.0 }
 0x15b   : > { %1409 = vmatmul.msk.f32.gmra.mxu2 %vm732_vm2, %v1746_v46 }
 0x164   : > { %v713_v47 = vpop.f32.mrf.mxu3 }
 0x165   : > { %v714_v49 = vadd.f32 %v1695_v48, %v713_v47  ;;  %v811_v48 = vld [vmem:[%s2066_s7 + $0x28] sm:$0xff] }
 0x166   : > { %894 = vmatpush.msrb.mxu1 %v811_v48  ;;  %1453 = vmatpush.msrb.mxu2 %v811_v48 }
 0x167   : > { %v1751_v50 = vmax.f32 %v714_v49, 0.0 }
 0x168   : > { %895 = vmatpush.msrb.mxu1 %v810_v53  ;;  %1454 = vmatpush.msrb.mxu2 %v810_v53 }
 0x169   : > { %1410 = vmatmul.msk.f32.vlgmr.msrb.gmra.mxu3 %vm732_vm2, %v1751_v50 }
 0x16a   : > { %896 = vmatpush.msrb.mxu1 %v809_v55  ;;  %1455 = vmatpush.msrb.mxu2 %v809_v55 }
 0x16c   : > { %897 = vmatpush.msrb.mxu1 %v808_v56  ;;  %1456 = vmatpush.msrb.mxu2 %v808_v56 }
 0x16e   : > { %898 = vmatpush.msrb.mxu1 %v807_v57  ;;  %1457 = vmatpush.msrb.mxu2 %v807_v57 }
 0x170   : > { %899 = vmatpush.msrb.mxu1 %v806_v58  ;;  %1458 = vmatpush.msrb.mxu2 %v806_v58 }
 0x171   : > { %1411 = vmatmul.msk.f32.vlgmr.msra.gmra.mxu3 %vm732_vm2, %v1698_v54 }
 0x179   : > { %1412 = vmatmul.msk.f32.gmra.mxu3 %vm732_vm2, %v1704_v6 }
 0x181   : > { %1413 = vmatmul.msk.f32.gmra.mxu3 %vm732_vm2, %v1712_v20 }
 0x189   : > { %1414 = vmatmul.msk.f32.gmra.mxu3 %vm732_vm2, %v1719_v28 }
 0x191   : > { %1415 = vmatmul.msk.f32.gmra.mxu3 %vm732_vm2, %v1724_v31 }
 0x199   : > { %1416 = vmatmul.msk.f32.gmra.mxu3 %vm732_vm2, %v1741_v43 }
 0x1a1   : > { %1417 = vmatmul.msk.f32.gmra.mxu3 %vm732_vm2, %v1746_v46 }
 0x1a9   : > { %1418 = vmatmul.msk.f32.gmra.mxu3 %vm732_vm2, %v1751_v50 }
 0x1ae   : > { %v774_v60 = vpop.f32.mrf.mxu2 }
 0x1af   : > { %v775_v61 = vadd.f32 %v1472_v59, %v774_v60 }
 0x1b1   : > { %v798_v62 = vmax.f32 %v775_v61, 0.0 }
 0x1b3   : > { %1419 = vmatmul.msk.f32.vlgmr.msrb.gmra.mxu1 %vm859_vm14, %v798_v62 }
 0x1b6   : > { %v777_v63 = vpop.f32.mrf.mxu2 }
 0x1b7   : > { %v778_v0 = vadd.f32 %v1472_v59, %v777_v63 }
 0x1b9   : > { %v799_v1 = vmax.f32 %v778_v0, 0.0 }
 0x1bb   : > { %1420 = vmatmul.msk.f32.gmra.mxu1 %vm859_vm14, %v799_v1 }
 0x1be   : > { %v780_v2 = vpop.f32.mrf.mxu2 }
 0x1bf   : > { %v781_v3 = vadd.f32 %v1472_v59, %v780_v2 }
 0x1c1   : > { %v800_v4 = vmax.f32 %v781_v3, 0.0 }
 0x1c3   : > { %1421 = vmatmul.msk.f32.gmra.mxu1 %vm859_vm14, %v800_v4 }
 0x1c6   : > { %v783_v5 = vpop.f32.mrf.mxu2 }
 0x1c7   : > { %v784_v7 = vadd.f32 %v1472_v59, %v783_v5  ;;  %v1835_v5 = vpop.permute.xlu1 %514 }
 0x1c9   : > { %v801_v8 = vmax.f32 %v784_v7, 0.0 }
 0x1cb   : > { %1422 = vmatmul.msk.f32.gmra.mxu1 %vm859_vm14, %v801_v8 }
 0x1ce   : > { %v786_v9 = vpop.f32.mrf.mxu2 }
 0x1cf   : > { %v787_v10 = vadd.f32 %v1472_v59, %v786_v9 }
 0x1d1   : > { %v802_v11 = vmax.f32 %v787_v10, 0.0 }
 0x1d3   : > { %1423 = vmatmul.msk.f32.vlgmr.msrb.gmra.mxu2 %vm859_vm14, %v802_v11 }
 0x1d6   : > { %v789_v12 = vpop.f32.mrf.mxu2 }
 0x1d7   : > { %v790_v13 = vadd.f32 %v1472_v59, %v789_v12 }
 0x1d9   : > { %v803_v14 = vmax.f32 %v790_v13, 0.0 }
 0x1db   : > { %1424 = vmatmul.msk.f32.gmra.mxu2 %vm859_vm14, %v803_v14 }
 0x1de   : > { %v792_v15 = vpop.f32.mrf.mxu2 }
 0x1df   : > { %v793_v16 = vadd.f32 %v1472_v59, %v792_v15 }
 0x1e1   : > { %v804_v17 = vmax.f32 %v793_v16, 0.0 }
 0x1e3   : > { %1425 = vmatmul.msk.f32.gmra.mxu2 %vm859_vm14, %v804_v17 }
 0x1ec   : > { %v795_v18 = vpop.f32.mrf.mxu3 }
 0x1ed   : > { %v796_v19 = vadd.f32 %v1472_v59, %v795_v18 }
 0x1ef   : > { %v805_v21 = vmax.f32 %v796_v19, 0.0 }
 0x1f1   : > { %1426 = vmatmul.msk.f32.gmra.mxu2 %vm859_vm14, %v805_v21 }
 0x1f4   : > { %v835_v22 = vpop.f32.mrf.mxu3 }
 0x1fc   : > { %v838_v27 = vpop.f32.mrf.mxu3 }
 0x204   : > { %v841_v41 = vpop.f32.mrf.mxu3 }
 0x20c   : > { %v844_v55 = vpop.f32.mrf.mxu3 }
 0x214   : > { %v847_v11 = vpop.f32.mrf.mxu3 }
 0x230   : > { %v901_v24 = vpop.f32.mrf.mxu1 }
 0x231   : > { %v902_v25 = vadd.f32 %v901_v24, %v835_v22 }
 0x233   : > { %v1812_v26 = vadd.f32 %v1809_v23, %v902_v25 }
 0x235   : > { %v1427_v29 = vmul.f32 -1.442695, %v1812_v26  ;;  %961 = vrot.lane.b32.xlu2 %v1812_v26, %s1530_s22 }
 0x237   : > { %1480 = vpow2.f32 %v1427_v29 }
 0x238   : > { %v904_v30 = vpop.f32.mrf.mxu1 }
 0x239   : > { %v905_v32 = vadd.f32 %v904_v30, %v838_v27 }
 0x23b   : > { %v1818_v33 = vadd.f32 %v1809_v23, %v905_v32 }
 0x23d   : > { %v1481_v34 = vpop.eup %1480  ;;  %v1428_v40 = vmul.f32 -1.442695, %v1818_v33  ;;  %963 = vrot.lane.b32.xlu0 %v1818_v33, %s1530_s22 }
 0x23e   : > { %v1017_v42 = vadd.f32 1.0, %v1481_v34  ;;  %v1848_v34 = vpop.permute.xlu2 %516 }
 0x23f   : > { %1482 = vpow2.f32 %v1428_v40 }
 0x240   : > { %1484 = vrcp.f32 %v1017_v42  ;;  %v907_v44 = vpop.f32.mrf.mxu1  ;;  %v1036_v59 = vand.u32 2147483648, %v1017_v42  ;;  %v1034_v62 = vand.u32 2147483647, %v1017_v42  ;;  %vm1030_vm0 = vweird.f32 %v1017_v42 }
 0x241   : > { %v908_v45 = vadd.f32 %v907_v44, %v841_v41  ;;  %v850_v44 = vpop.f32.mrf.mxu3 }
 0x242   : > { %v1037_v4 = vor.u32 1.1754944e-38, %v1036_v59  ;;  %vm1035_vm3 = vcmp.eq.f32.partialorder %v1034_v62, 8.507059e+37 }
 0x243   : > { %v1824_v47 = vadd.f32 %v1809_v23, %v908_v45 }
 0x245   : > { %v1483_v49 = vpop.eup %1482  ;;  %v1429_v51 = vmul.f32 -1.442695, %v1824_v47  ;;  %965 = vrot.lane.b32.xlu1 %v1824_v47, %s1530_s22 }
 0x246   : > { %v1485_v52 = vpop.eup %1484  ;;  %v1018_v48 = vadd.f32 1.0, %v1483_v49 }
 0x247   : > { %1486 = vpow2.f32 %v1429_v51  ;;  %v1026_v53 = vmul.f32 %v1485_v52, %v1017_v42  ;;  %vm1031_vm15 = vweird.f32 %v1485_v52 }
 0x248   : > { %1488 = vrcp.f32 %v1018_v48  ;;  %v910_v56 = vpop.f32.mrf.mxu1  ;;  %vm1032_vm1 = vmor %vm1030_vm0, %vm1031_vm15  ;;  %v1051_v12 = vand.u32 2147483648, %v1018_v48  ;;  %v1049_v14 = vand.u32 2147483647, %v1018_v48  ;;  %vm1045_vm5 = vweird.f32 %v1018_v48 }
 0x249   : > { %v911_v57 = vadd.f32 %v910_v56, %v844_v55  ;;  %v1027_v58 = vsub.f32 1.0, %v1026_v53  ;;  %vm582_vm0 = vweird.f32 %v1835_v5 }
 0x24a   : > { %v1052_v21 = vor.u32 1.1754944e-38, %v1051_v12  ;;  %vm1050_vm7 = vcmp.eq.f32.partialorder %v1049_v14, 8.507059e+37 }
 0x24b   : > { %v1830_v60 = vadd.f32 %v1809_v23, %v911_v57  ;;  %v1028_v61 = vmul.f32 %v1485_v52, %v1027_v58 }
 0x24d   : > { %v1487_v63 = vpop.eup %1486  ;;  %v1430_v0 = vmul.f32 -1.442695, %v1830_v60  ;;  %967 = vrot.lane.b32.xlu2 %v1830_v60, %s1530_s22  ;;  %v1029_v1 = vadd.f32 %v1485_v52, %v1028_v61 }
 0x24e   : > { %v1489_v2 = vpop.eup %1488  ;;  %v1019_v3 = vadd.f32 1.0, %v1487_v63 }
 0x24f   : > { %1490 = vpow2.f32 %v1430_v0  ;;  %v1033_v7 = vsel %vm1032_vm1, %v1485_v52, %v1029_v1  ;;  %v1041_v8 = vmul.f32 %v1489_v2, %v1018_v48  ;;  %vm1046_vm4 = vweird.f32 %v1489_v2 }
 0x250   : > { %1492 = vrcp.f32 %v1019_v3  ;;  %v1038_v9 = vsel %vm1035_vm3, %v1037_v4, %v1033_v7  ;;  %vm1047_vm6 = vmor %vm1045_vm5, %vm1046_vm4  ;;  %v1066_v45 = vand.u32 2147483648, %v1019_v3  ;;  %vm1060_vm9 = vweird.f32 %v1019_v3 }
 0x251   : > { %1153 = vrot.lane.b32.xlu1 %v1038_v9, %s1532_s29  ;;  %v1042_v10 = vsub.f32 1.0, %v1041_v8  ;;  %1494 = vrcp.f32 %v1835_v5  ;;  %v1064_v51 = vand.u32 2147483647, %v1019_v3 }
 0x252   : > { %v1067_v58 = vor.u32 1.1754944e-38, %v1066_v45 }
 0x253   : > { %v1043_v13 = vmul.f32 %v1489_v2, %v1042_v10  ;;  %vm1065_vm11 = vcmp.eq.f32.partialorder %v1064_v51, 8.507059e+37  ;;  %v853_v10 = vpop.f32.mrf.mxu3 }
 0x255   : > { %v1491_v15 = vpop.eup %1490  ;;  %v1044_v16 = vadd.f32 %v1489_v2, %v1043_v13 }
 0x256   : > { %v1493_v17 = vpop.eup %1492  ;;  %v1839_v18 = vadd.f32 1.0, %v1491_v15  ;;  %v913_v19 = vpop.f32.mrf.mxu2 }
 0x257   : > { %v914_v22 = vadd.f32 %v913_v19, %v847_v11  ;;  %v1048_v24 = vsel %vm1047_vm6, %v1489_v2, %v1044_v16  ;;  %v1056_v25 = vmul.f32 %v1493_v17, %v1019_v3  ;;  %v1841_v27 = vpop.eup %1494  ;;  %vm1061_vm8 = vweird.f32 %v1493_v17 }
 0x258   : > { %1496 = vrcp.f32 %v1839_v18  ;;  %v1053_v29 = vsel %vm1050_vm7, %v1052_v21, %v1048_v24  ;;  %v578_v40 = vmul.f32 %v1841_v27, %v1835_v5  ;;  %vm1062_vm10 = vmor %vm1060_vm9, %vm1061_vm8  ;;  %v1081_v7 = vand.u32 2147483648, %v1839_v18 }
 0x259   : > { %v1845_v30 = vadd.f32 %v1809_v23, %v914_v22  ;;  %1155 = vrot.lane.b32.xlu2 %v1053_v29, %s1532_s29  ;;  %v1057_v32 = vsub.f32 1.0, %v1056_v25  ;;  %vm1075_vm13 = vweird.f32 %v1839_v18  ;;  %v1079_v9 = vand.u32 2147483647, %v1839_v18 }
 0x25a   : > { %v579_v53 = vsub.f32 1.0, %v578_v40  ;;  %vm583_vm15 = vweird.f32 %v1841_v27  ;;  %v588_v16 = vand.u32 2147483648, %v1835_v5  ;;  %v586_v19 = vand.u32 2147483647, %v1835_v5 }
 0x25b   : > { %v1431_v41 = vmul.f32 -1.442695, %v1845_v30  ;;  %969 = vrot.lane.b32.xlu0 %v1845_v30, %s1530_s22  ;;  %v1058_v42 = vmul.f32 %v1493_v17, %v1057_v32  ;;  %vm1080_vm1 = vcmp.eq.f32.partialorder %v1079_v9, 8.507059e+37  ;;  %vm584_vm3 = vmor %vm582_vm0, %vm583_vm15  ;;  %vm597_vm9 = vweird.f32 %v1848_v34 }
 0x25c   : > { %v580_v0 = vmul.f32 %v1841_v27, %v579_v53  ;;  %v589_v40 = vor.u32 1.1754944e-38, %v588_v16  ;;  %vm587_vm4 = vcmp.eq.f32.partialorder %v586_v19, 8.507059e+37  ;;  %v856_v53 = vpop.f32.mrf.mxu3 }
 0x25d   : > { %1498 = vpow2.f32 %v1431_v41  ;;  %v1059_v49 = vadd.f32 %v1493_v17, %v1058_v42 }
 0x25e   : > { %v1497_v52 = vpop.eup %1496  ;;  %1500 = vrcp.f32 %v1848_v34  ;;  %v916_v48 = vpop.f32.mrf.mxu2  ;;  %v581_v14 = vadd.f32 %v1841_v27, %v580_v0 }
 0x25f   : > { %v917_v55 = vadd.f32 %v916_v48, %v850_v44  ;;  %v1063_v56 = vsel %vm1062_vm10, %v1493_v17, %v1059_v49  ;;  %v1071_v57 = vmul.f32 %v1497_v52, %v1839_v18  ;;  %vm1076_vm12 = vweird.f32 %v1497_v52 }
 0x260   : > { %v1068_v62 = vsel %vm1065_vm11, %v1067_v58, %v1063_v56  ;;  %vm1077_vm14 = vmor %vm1075_vm13, %vm1076_vm12  ;;  %v1082_v17 = vor.u32 1.1754944e-38, %v1081_v7  ;;  %v585_v25 = vsel %vm584_vm3, %v1841_v27, %v581_v14  ;;  %v1918_v14 = vpop.permute.xlu2 %518 }
 0x261   : > { %v1858_v59 = vadd.f32 %v1809_v23, %v917_v55  ;;  %v1072_v61 = vsub.f32 1.0, %v1071_v57  ;;  %v590_v42 = vsel %vm587_vm4, %v589_v40, %v585_v25 }
 0x262   : > { %v591_v49 = vmul.f32 %v590_v42, %v1650_v35 }
 0x263   : > { %v1499_v63 = vpop.eup %1498  ;;  %v1432_v1 = vmul.f32 -1.442695, %v1858_v59  ;;  %1157 = vrot.lane.b32.xlu0 %v1068_v62, %s1532_s29  ;;  %971 = vrot.lane.b32.xlu1 %v1858_v59, %s1530_s22  ;;  %v1073_v2 = vmul.f32 %v1497_v52, %v1072_v61 }
 0x264   : > { %v1865_v3 = vpop.eup %1500  ;;  %v1867_v4 = vadd.f32 1.0, %v1499_v63  ;;  %v603_v63 = vand.u32 2147483648, %v1848_v34 }
 0x265   : > { %1502 = vpow2.f32 %v1432_v1  ;;  %v1074_v8 = vadd.f32 %v1497_v52, %v1073_v2  ;;  %v593_v15 = vmul.f32 %v1865_v3, %v1848_v34  ;;  %vm598_vm6 = vweird.f32 %v1865_v3 }
 0x266   : > { %1504 = vrcp.f32 %v1867_v4  ;;  %v919_v11 = vpop.f32.mrf.mxu2  ;;  %v1096_v57 = vand.u32 2147483648, %v1867_v4  ;;  %vm1090_vm7 = vweird.f32 %v1867_v4  ;;  %v1094_v35 = vand.u32 2147483647, %v1867_v4  ;;  %vm599_vm10 = vmor %vm597_vm9, %vm598_vm6 }
 0x267   : > { %v920_v12 = vadd.f32 %v919_v11, %v853_v10  ;;  %v1078_v13 = vsel %vm1077_vm14, %v1497_v52, %v1074_v8  ;;  %v594_v32 = vsub.f32 1.0, %v593_v15  ;;  %v601_v2 = vand.u32 2147483647, %v1848_v34 }
 0x268   : > { %v1083_v21 = vsel %vm1080_vm1, %v1082_v17, %v1078_v13  ;;  %v1097_v7 = vor.u32 1.1754944e-38, %v1096_v57  ;;  %vm1095_vm11 = vcmp.eq.f32.partialorder %v1094_v35, 8.507059e+37  ;;  %v604_v10 = vor.u32 1.1754944e-38, %v603_v63 }
 0x269   : > { %v1880_v18 = vadd.f32 %v1809_v23, %v920_v12  ;;  %v595_v45 = vmul.f32 %v1865_v3, %v594_v32  ;;  %vm602_vm12 = vcmp.eq.f32.partialorder %v601_v2, 8.507059e+37  ;;  %v940_v2 = vld [vmem:[%s1945_s12 + $0x18] sm:$0xff] }
 0x26b   : > { %v1503_v22 = vpop.eup %1502  ;;  %v1433_v24 = vmul.f32 -1.442695, %v1880_v18  ;;  %1159 = vrot.lane.b32.xlu1 %v1083_v21, %s1532_s29  ;;  %973 = vrot.lane.b32.xlu2 %v1880_v18, %s1530_s22  ;;  %v596_v58 = vadd.f32 %v1865_v3, %v595_v45 }
 0x26c   : > { %v1505_v29 = vpop.eup %1504  ;;  %v1888_v41 = vadd.f32 1.0, %v1503_v22 }
 0x26d   : > { %1506 = vpow2.f32 %v1433_v24  ;;  %v1086_v5 = vmul.f32 %v1505_v29, %v1867_v4  ;;  %vm1091_vm5 = vweird.f32 %v1505_v29  ;;  %v600_v8 = vsel %vm599_vm10, %v1865_v3, %v596_v58 }
 0x26e   : > { %1508 = vrcp.f32 %v1888_v41  ;;  %vm1092_vm8 = vmor %vm1090_vm7, %vm1091_vm5  ;;  %v605_v34 = vsel %vm602_vm12, %v604_v10, %v600_v8  ;;  %vm1105_vm15 = vweird.f32 %v1888_v41  ;;  %v1109_v32 = vand.u32 2147483647, %v1888_v41 }
 0x26f   : > { %v1087_v44 = vsub.f32 1.0, %v1086_v5  ;;  %v606_v15 = vmul.f32 %v605_v34, %v1656_v36  ;;  %v1111_v36 = vand.u32 2147483648, %v1888_v41  ;;  %v939_v34 = vld [vmem:[%s1945_s12 + $0x10] sm:$0xff] }
 0x270   : > { %vm1110_vm5 = vcmp.eq.f32.partialorder %v1109_v32, 8.507059e+37 }
 0x271   : > { %v1088_v51 = vmul.f32 %v1505_v29, %v1087_v44  ;;  %v1112_v45 = vor.u32 1.1754944e-38, %v1111_v36 }
 0x273   : > { %v1507_v52 = vpop.eup %1506  ;;  %1223 = vrot.lane.b32.xlu2 %v591_v49, %s1531_s15  ;;  %v1089_v27 = vadd.f32 %v1505_v29, %v1088_v51  ;;  %v1937_v49 = vpop.permute.xlu2 %1217 }
 0x274   : > { %v1895_v48 = vpop.eup %1508  ;;  %v1023_v55 = vadd.f32 1.0, %v1507_v52  ;;  %v922_v56 = vpop.f32.mrf.mxu2  ;;  %v937_v52 = vld [vmem:[%s1945_s12] sm:$0xff] }
 0x275   : > { %v923_v61 = vadd.f32 %v922_v56, %v856_v53  ;;  %v1101_v62 = vmul.f32 %v1895_v48, %v1888_v41  ;;  %v1093_v1 = vsel %vm1092_vm8, %v1505_v29, %v1089_v27  ;;  %vm1106_vm13 = vweird.f32 %v1895_v48 }
 0x276   : > { %1510 = vrcp.f32 %v1023_v55  ;;  %v1098_v11 = vsel %vm1095_vm11, %v1097_v7, %v1093_v1  ;;  %v1126_v16 = vand.u32 2147483648, %v1023_v55  ;;  %v1124_v21 = vand.u32 2147483647, %v1023_v55  ;;  %vm1928_vm1 = vmor %vm1105_vm15, %vm1106_vm13  ;;  %v1952_v1 = vpop.permute.xlu0 %520  ;;  %v523_v7 = vpop.permute.xlu1 %522 }
 0x277   : > { %v1907_v0 = vadd.f32 %v1809_v23, %v923_v61  ;;  %v1102_v9 = vsub.f32 1.0, %v1101_v62  ;;  %vm1120_vm0 = vweird.f32 %v1023_v55  ;;  %vm945_vm6 = vcmp.gt.f32.partialorder %v937_v52, 0.0  ;;  %v942_v52 = vld [vmem:[%s1945_s12 + $0x28] sm:$0xff] }
 0x278   : > { %v1127_v40 = vor.u32 1.1754944e-38, %v1126_v16  ;;  %vm1125_vm4 = vcmp.eq.f32.partialorder %v1124_v21, 8.507059e+37  ;;  %vm948_vm11 = vcmp.gt.f32.partialorder %v940_v2, 0.0  ;;  %vm947_vm13 = vcmp.gt.f32.partialorder %v939_v34, 0.0 }
 0x279   : > { %v1434_v4 = vmul.f32 -1.442695, %v1907_v0  ;;  %975 = vrot.lane.b32.xlu0 %v1907_v0, %s1530_s22  ;;  %v1103_v13 = vmul.f32 %v1895_v48, %v1102_v9  ;;  %v938_v9 = vld [vmem:[%s1945_s12 + $0x8] sm:$0xff]  ;;  %v646_v36 = vand.u32 2147483647, %v523_v7 }
 0x27a   : > { %vm946_vm12 = vcmp.gt.f32.partialorder %v938_v9, 0.0 }
 0x27b   : > { %1512 = vpow2.f32 %v1434_v4  ;;  %1161 = vrot.lane.b32.xlu2 %v1098_v11, %s1532_s29  ;;  %v1104_v22 = vadd.f32 %v1895_v48, %v1103_v13 }
 0x27c   : > { %v1511_v23 = vpop.eup %1510 }
 0x27d   : > { %v1116_v12 = vmul.f32 %v1511_v23, %v1023_v55  ;;  %vm1121_vm14 = vweird.f32 %v1511_v23  ;;  %v1108_v42 = vsel %vm1928_vm1, %v1895_v48, %v1104_v22  ;;  %v648_v22 = vand.u32 2147483648, %v523_v7 }
 0x27e   : > { %vm1122_vm3 = vmor %vm1120_vm0, %vm1121_vm14  ;;  %v1113_v41 = vsel %vm1110_vm5, %v1112_v45, %v1108_v42  ;;  %v1960_v10 = vpop.permute.xlu1 %1221  ;;  %vm642_vm0 = vweird.f32 %v523_v7  ;;  %vm950_vm5 = vcmp.gt.f32.partialorder %v942_v52, 0.0 }
 0x27f   : > { %v1117_v3 = vsub.f32 1.0, %v1116_v12  ;;  %v649_v32 = vor.u32 1.1754944e-38, %v648_v22 }
 0x281   : > { %v1513_v17 = vpop.eup %1512  ;;  %1225 = vrot.lane.b32.xlu0 %v606_v15, %s1531_s15  ;;  %v1118_v19 = vmul.f32 %v1511_v23, %v1117_v3 }
 0x282   : > { %v1024_v24 = vadd.f32 1.0, %v1513_v17 }
 0x283   : > { %v1119_v25 = vadd.f32 %v1511_v23, %v1118_v19  ;;  %v943_v19 = vld [vmem:[%s1945_s12 + $0x30] sm:$0xff] }
 0x284   : > { %1514 = vrcp.f32 %v1024_v24  ;;  %v1141_v53 = vand.u32 2147483648, %v1024_v24  ;;  %v1139_v57 = vand.u32 2147483647, %v1024_v24  ;;  %vm1135_vm8 = vweird.f32 %v1024_v24 }
 0x285   : > { %v1123_v5 = vsel %vm1122_vm3, %v1511_v23, %v1119_v25  ;;  %1516 = vrcp.f32 %v523_v7  ;;  %vm951_vm14 = vcmp.gt.f32.partialorder %v943_v19, 0.0  ;;  %vm647_vm3 = vcmp.eq.f32.partialorder %v646_v36, 8.507059e+37 }
 0x286   : > { %v1128_v44 = vsel %vm1125_vm4, %v1127_v40, %v1123_v5  ;;  %v1142_v35 = vor.u32 1.1754944e-38, %v1141_v53  ;;  %vm1140_vm10 = vcmp.eq.f32.partialorder %v1139_v57, 8.507059e+37  ;;  %1518 = vrcp.f32 %v1952_v1  ;;  %v941_v40 = vld [vmem:[%s1945_s12 + $0x20] sm:$0xff] }
 0x287   : > { %1165 = vrot.lane.b32.xlu1 %v1128_v44, %s1532_s29  ;;  %vm949_vm4 = vcmp.gt.f32.partialorder %v941_v40, 0.0  ;;  %1520 = vrcp.f32 %v1918_v14 }
 0x289   : > { %1163 = vrot.lane.b32.xlu0 %v1113_v41, %s1532_s29 }
 0x28a   : > { %v1515_v51 = vpop.eup %1514 }
 0x28b   : > { %v1131_v27 = vmul.f32 %v1515_v51, %v1024_v24  ;;  %vm1136_vm7 = vweird.f32 %v1515_v51  ;;  %v1517_v12 = vpop.eup %1516 }
 0x28c   : > { %vm1137_vm9 = vmor %vm1135_vm8, %vm1136_vm7  ;;  %v638_v13 = vmul.f32 %v1517_v12, %v523_v7  ;;  %vm643_vm15 = vweird.f32 %v1517_v12  ;;  %v1519_v21 = vpop.eup %1518  ;;  %vm627_vm7 = vweird.f32 %v1952_v1  ;;  %v618_v7 = vand.u32 2147483648, %v1918_v14 }
 0x28d   : > { %v1132_v48 = vsub.f32 1.0, %v1131_v27  ;;  %vm644_vm1 = vmor %vm642_vm0, %vm643_vm15  ;;  %v623_v25 = vmul.f32 %v1519_v21, %v1952_v1  ;;  %v1521_v57 = vpop.eup %1520  ;;  %vm1249_vm15 = vcmask 269312   ;;  %vm1258_vm0 = vcmask 277504  }
 0x28e   : > { %v639_v3 = vsub.f32 1.0, %v638_v13 }
 0x28f   : > { %v962_v55 = vpop.permute.xlu2 %961  ;;  %v1133_v56 = vmul.f32 %v1515_v51, %v1132_v48  ;;  %v624_v42 = vsub.f32 1.0, %v623_v25  ;;  %v633_v48 = vand.u32 2147483648, %v1952_v1 }
 0x290   : > { %v985_v58 = vsel %vm945_vm6, %v962_v55, %v1812_v26  ;;  %v1955_v26 = vpop.permute.xlu0 %1219  ;;  %v640_v17 = vmul.f32 %v1517_v12, %v639_v3  ;;  %vm628_vm6 = vweird.f32 %v1519_v21 }
 0x291   : > { %1185 = vrot.lane.b32.xlu0 %v985_v58, %s1533_s16  ;;  %v1134_v61 = vadd.f32 %v1515_v51, %v1133_v56  ;;  %vm629_vm8 = vmor %vm627_vm7, %vm628_vm6  ;;  %v634_v56 = vor.u32 1.1754944e-38, %v633_v48 }
 0x293   : > { %v1138_v62 = vsel %vm1137_vm9, %v1515_v51, %v1134_v61  ;;  %v608_v61 = vmul.f32 %v1521_v57, %v1918_v14 }
 0x294   : > { %v1143_v63 = vsel %vm1140_vm10, %v1142_v35, %v1138_v62 }
 0x295   : > { %1167 = vrot.lane.b32.xlu2 %v1143_v63, %s1532_s29  ;;  %v609_v62 = vsub.f32 1.0, %v608_v61 }
 0x297   : > { %v610_v2 = vmul.f32 %v1521_v57, %v609_v62 }
 0x2a7   : > { %v968_v4 = vpop.permute.xlu2 %967 }
 0x2a8   : > { %v988_v8 = vsel %vm948_vm11, %v968_v4, %v1830_v60  ;;  %vm613_vm11 = vweird.f32 %v1521_v57 }
 0x2a9   : > { %1191 = vrot.lane.b32.xlu0 %v988_v8, %s1533_s16  ;;  %v616_v8 = vand.u32 2147483647, %v1918_v14 }
 0x2af   : > { %v964_v11 = vpop.permute.xlu0 %963 }
 0x2b0   : > { %v986_v23 = vsel %vm946_vm12, %v964_v11, %v1818_v33  ;;  %v641_v33 = vadd.f32 %v1517_v12, %v640_v17  ;;  %vm612_vm12 = vweird.f32 %v1918_v14  ;;  %v619_v11 = vor.u32 1.1754944e-38, %v618_v7 }
 0x2b1   : > { %1187 = vrot.lane.b32.xlu1 %v986_v23, %s1533_s16 }
 0x2b2   : > { %v645_v29 = vsel %vm644_vm1, %v1517_v12, %v641_v33  ;;  %vm1267_vm1 = vcmask 285696  }
 0x2b3   : > { %v1967_v16 = vpop.permute.xlu2 %1155  ;;  %v650_v5 = vsel %vm647_vm3, %v649_v32, %v645_v29 }
 0x2b4   : > { %v651_v41 = vmul.f32 %v650_v5, %v1674_v39  ;;  %v631_v39 = vand.u32 2147483647, %v1952_v1  ;;  %v944_v1 = vld [vmem:[%s1945_s12 + $0x38] sm:$0xff] }
 0x2b5   : > { %vm952_vm10 = vcmp.gt.f32.partialorder %v944_v1, 0.0 }
 0x2b6   : > { %vm632_vm9 = vcmp.eq.f32.partialorder %v631_v39, 8.507059e+37 }
 0x2b7   : > { %v966_v15 = vpop.permute.xlu1 %965 }
 0x2b8   : > { %v987_v60 = vsel %vm947_vm13, %v966_v15, %v1824_v47  ;;  %vm614_vm13 = vmor %vm612_vm12, %vm613_vm11 }
 0x2b9   : > { %1189 = vrot.lane.b32.xlu2 %v987_v60, %s1533_s16 }
 0x2c3   : > { %v1154_v44 = vpop.permute.xlu1 %1153 }
 0x2c5   : > { %v974_v24 = vpop.permute.xlu2 %973 }
 0x2c6   : > { %v991_v47 = vsel %vm951_vm14, %v974_v24, %v1880_v18  ;;  %v625_v18 = vmul.f32 %v1519_v21, %v624_v42  ;;  %vm617_vm14 = vcmp.eq.f32.partialorder %v616_v8, 8.507059e+37 }
 0x2c7   : > { %1197 = vrot.lane.b32.xlu0 %v991_v47, %s1533_s16 }
 0x2c8   : > { %v626_v27 = vadd.f32 %v1519_v21, %v625_v18 }
 0x2ca   : > { %v630_v55 = vsel %vm629_vm8, %v1519_v21, %v626_v27 }
 0x2cb   : > { %v635_v58 = vsel %vm632_vm9, %v634_v56, %v630_v55 }
 0x2cc   : > { %v636_v35 = vmul.f32 %v635_v58, %v1668_v38 }
 0x2cd   : > { %v970_v45 = vpop.permute.xlu0 %969  ;;  %v1224_v13 = vpop.permute.xlu2 %1223 }
 0x2ce   : > { %v989_v51 = vsel %vm949_vm4, %v970_v45, %v1845_v30 }
 0x2cf   : > { %1193 = vrot.lane.b32.xlu1 %v989_v51, %s1533_s16  ;;  %1231 = vrot.lane.b32.xlu0 %v651_v41, %s1531_s15 }
 0x2d5   : > { %v972_v53 = vpop.permute.xlu1 %971  ;;  %v1158_v63 = vpop.permute.xlu0 %1157 }
 0x2d6   : > { %v990_v30 = vsel %vm950_vm5, %v972_v53, %v1858_v59  ;;  %v611_v59 = vadd.f32 %v1521_v57, %v610_v2  ;;  %v1162_v14 = vpop.permute.xlu2 %1161  ;;  %v1243_v19 = vsel %vm732_vm2, %v1712_v20, %v1158_v63 }
 0x2d7   : > { %1195 = vrot.lane.b32.xlu2 %v990_v30, %s1533_s16 }
 0x2d8   : > { %v615_v38 = vsel %vm614_vm13, %v1521_v57, %v611_v59 }
 0x2d9   : > { %v620_v23 = vsel %vm617_vm14, %v619_v11, %v615_v38 }
 0x2da   : > { %v621_v12 = vmul.f32 %v620_v23, %v1662_v37 }
 0x2dd   : > { %v1160_v33 = vpop.permute.xlu1 %1159 }
 0x2df   : > { %1229 = vrot.lane.b32.xlu2 %v636_v35, %s1531_s15 }
 0x2eb   : > { %v976_v4 = vpop.permute.xlu0 %975 }
 0x2ec   : > { %v992_v9 = vsel %vm952_vm10, %v976_v4, %v1907_v0  ;;  %v1241_v0 = vsel %vm732_vm2, %v1698_v54, %v1154_v44 }
 0x2ed   : > { %1199 = vrot.lane.b32.xlu1 %v992_v9, %s1533_s16 }
 0x2ef   : > { %v1168_v54 = vpop.permute.xlu2 %1167 }
 0x2f0   : > { %v1248_v53 = vsel %vm732_vm2, %v1751_v50, %v1168_v54 }
 0x2f3   : > { %v1226_v34 = vpop.permute.xlu0 %1225 }
 0x2f5   : > { %1227 = vrot.lane.b32.xlu1 %v621_v12, %s1531_s15 }
 0x2f9   : > { %v1166_v47 = vpop.permute.xlu1 %1165 }
 0x2fa   : > { %v1247_v45 = vsel %vm732_vm2, %v1746_v46, %v1166_v47 }
 0x2fb   : > { %v1164_v15 = vpop.permute.xlu0 %1163 }
 0x2fc   : > { %v1246_v57 = vsel %vm732_vm2, %v1741_v43, %v1164_v15 }
 0x303   : > { %v1186_v60 = vpop.permute.xlu0 %1185 }
 0x304   : > { %v1250_v37 = vsel %vm1249_vm15, %v1241_v0, %v1186_v60 }
 0x305   : > { %v1259_v3 = vsel %vm1258_vm0, %v1250_v37, %v1937_v49  ;;  %v1244_v49 = vsel %vm732_vm2, %v1719_v28, %v1160_v33 }
 0x306   : > { %v1268_v17 = vsel %vm1267_vm1, %v1259_v3, 0.0 }
 0x307   : > { %1276 = vst [vmem:[%s2004_s19] sm:$0xff] %v1268_v17 }
 0x313   : > { %v1190_v21 = vpop.permute.xlu2 %1189 }
 0x314   : > { %v1252_v22 = vsel %vm1249_vm15, %v1243_v19, %v1190_v21 }
 0x315   : > { %v1261_v24 = vsel %vm1258_vm0, %v1252_v22, %v1960_v10  ;;  %v1242_v10 = vsel %vm732_vm2, %v1704_v6, %v1967_v16 }
 0x316   : > { %v1270_v36 = vsel %vm1267_vm1, %v1261_v24, 0.0 }
 0x317   : > { %1278 = vst [vmem:[%s2004_s19 + $0x10] sm:$0xff] %v1270_v36 }
 0x31b   : > { %v1192_v25 = vpop.permute.xlu0 %1191 }
 0x31c   : > { %v1253_v29 = vsel %vm1249_vm15, %v1244_v49, %v1192_v25 }
 0x31d   : > { %v1262_v20 = vsel %vm1258_vm0, %v1253_v29, %v1224_v13 }
 0x31e   : > { %v1271_v32 = vsel %vm1267_vm1, %v1262_v20, 0.0 }
 0x31f   : > { %1279 = vst [vmem:[%s2004_s19 + $0x18] sm:$0xff] %v1271_v32 }
 0x323   : > { %v1188_v40 = vpop.permute.xlu1 %1187 }
 0x324   : > { %v1251_v5 = vsel %vm1249_vm15, %v1242_v10, %v1188_v40 }
 0x325   : > { %v1260_v28 = vsel %vm1258_vm0, %v1251_v5, %v1955_v26  ;;  %v1245_v26 = vsel %vm732_vm2, %v1724_v31, %v1162_v14 }
 0x326   : > { %v1269_v42 = vsel %vm1267_vm1, %v1260_v28, 0.0 }
 0x327   : > { %1277 = vst [vmem:[%s2004_s19 + $0x8] sm:$0xff] %v1269_v42 }
 0x331   : > { %v1196_v44 = vpop.permute.xlu2 %1195 }
 0x332   : > { %v1255_v58 = vsel %vm1249_vm15, %v1246_v57, %v1196_v44 }
 0x339   : > { %v1198_v41 = vpop.permute.xlu0 %1197  ;;  %v1230_v51 = vpop.permute.xlu2 %1229 }
 0x33a   : > { %v1256_v18 = vsel %vm1249_vm15, %v1247_v45, %v1198_v41 }
 0x33b   : > { %v1265_v6 = vsel %vm1258_vm0, %v1256_v18, %v1230_v51 }
 0x33c   : > { %v1274_v16 = vsel %vm1267_vm1, %v1265_v6, 0.0 }
 0x33d   : > { %1282 = vst [vmem:[%s2004_s19 + $0x30] sm:$0xff] %v1274_v16 }
 0x341   : > { %v1194_v52 = vpop.permute.xlu1 %1193  ;;  %v1232_v30 = vpop.permute.xlu0 %1231 }
 0x342   : > { %v1254_v27 = vsel %vm1249_vm15, %v1245_v26, %v1194_v52 }
 0x343   : > { %v1263_v48 = vsel %vm1258_vm0, %v1254_v27, %v1226_v34 }
 0x344   : > { %v1272_v46 = vsel %vm1267_vm1, %v1263_v48, 0.0 }
 0x345   : > { %1280 = vst [vmem:[%s2004_s19 + $0x20] sm:$0xff] %v1272_v46 }
 0x35f   : > { %v1200_v39 = vpop.permute.xlu1 %1199 }
 0x360   : > { %v1257_v55 = vsel %vm1249_vm15, %v1248_v53, %v1200_v39 }
 0x361   : > { %v1266_v56 = vsel %vm1258_vm0, %v1257_v55, %v1232_v30 }
 0x362   : > { %v1275_v31 = vsel %vm1267_vm1, %v1266_v56, 0.0 }
 0x363   : > { %1283 = vst [vmem:[%s2004_s19 + $0x38] sm:$0xff] %v1275_v31 }
 0x367   : > { %v1228_v61 = vpop.permute.xlu1 %1227 }
 0x368   : > { %v1264_v35 = vsel %vm1258_vm0, %v1255_v58, %v1228_v61 }
 0x369   : > { %v1273_v62 = vsel %vm1267_vm1, %v1264_v35, 0.0 }
 0x36a   : > { %1281 = vst [vmem:[%s2004_s19 + $0x28] sm:$0xff] %v1273_v62 }
 0x36b PF: > { %s20_s13 = sadd.s32 1, %s1528_s13  }
 0x36c   : > { %p17_p5 = scmp.ge.s32.totalorder %s20_s13, 4  }
 0x36e   :  { %19 = sbr.rel (!%p17_p5) target bundleno = 1 (0x1), region = 93 }

</bundles_post_ra>
